<compile_context>
chip_gen: v7x
topology: tpu7x:2x2x1
jax: 0.10.0
libtpu: 0.0.40
codegen_flags: <defaults>
</compile_context>

<pallas_src>
import numpy as np
import jax
import jax.numpy as jnp
from jax.experimental import pallas as pl
from jax.experimental.pallas import tpu as pltpu


_TARGET_BLOCK_BYTES = 4 * 1024 * 1024   # ~4 MiB blocks: near HBM roofline on all chips
_VMEM_LIMIT_BYTES = 32 * 1024 * 1024    # explicit; safe on v5e/v6e/v7x


def _ceil_to(v, m):
    return -(-int(v) // int(m)) * int(m)


def _padded_block_bytes(block_shape, itemsize):
    """VMEM footprint of one block including (sublane, lane) tile padding."""
    packing = max(1, 4 // itemsize)
    dims = list(block_shape) if len(block_shape) >= 2 else [1] + list(block_shape)
    dims[-1] = _ceil_to(dims[-1], 128)
    dims[-2] = _ceil_to(dims[-2], 8 * packing)
    n = 1
    for d in dims:
        n *= int(d)
    return n * itemsize


# ----------------------------- kernels -------------------------------------


def _flatten_block_kernel(x_ref, o_ref):
    # On-chip flatten of one batch tile: (tile_b, *inner) -> (tile_b, D).
    o_ref[...] = x_ref[...].reshape(o_ref.shape)


def _copy_block_kernel(x_ref, o_ref):
    # Pure streaming copy of an already-flat tile.
    o_ref[...] = x_ref[...]


# ------------------------- fused (single-pass) path ------------------------


def _flatten_fused(x, B, D):
    dtype = x.dtype
    itemsize = np.dtype(dtype).itemsize
    sub = 8 * max(1, 4 // itemsize)          # legal second-minor multiple for this dtype
    inner = tuple(int(d) for d in x.shape[1:])
    ndim = x.ndim
    nbytes = B * D * itemsize

    # Batch tile: multiple of the sublane packing (so the lane-dense (tile_b, D)
    # output block is layout-legal), ~4 MiB target.
    if B <= sub:
        tile_b = B                            # full extent: always legal
    else:
        want = max(sub, (int(_TARGET_BLOCK_BYTES // max(1, D * itemsize)) // sub) * sub)
        tile_b = min((B // sub) * sub, want)
        # Feed both v7x TensorCores: >=2 (roughly even) grid steps for non-tiny arrays.
        if tile_b >= B and B >= 2 * sub and nbytes >= (2 << 20):
            tile_b = _ceil_to((B + 1) // 2, sub)

    # Respect VMEM: double-buffered in+out blocks (input counts its (8,128)
    # layout padding) must fit comfortably under the 32 MiB limit.
    def _footprint(tb):
        return 2 * (_padded_block_bytes((tb,) + inner, itemsize)
                    + _padded_block_bytes((tb, D), itemsize))

    while tile_b > sub and _footprint(tile_b) > (_VMEM_LIMIT_BYTES * 3) // 4:
        tile_b = max(sub, ((tile_b // 2) // sub) * sub)
    if _footprint(tile_b) > _VMEM_LIMIT_BYTES:
        raise ValueError("fused flatten: block does not fit in VMEM budget")

    grid = (pl.cdiv(B, tile_b),)
    in_spec = pl.BlockSpec((tile_b,) + inner, lambda i: (i,) + (0,) * (ndim - 1))
    out_spec = pl.BlockSpec((tile_b, D), lambda i: (i, 0))

    return pl.pallas_call(
        _flatten_block_kernel,
        out_shape=jax.ShapeDtypeStruct((B, D), dtype),
        grid=grid,
        in_specs=[in_spec],
        out_specs=out_spec,
        compiler_params=pltpu.CompilerParams(
            dimension_semantics=("parallel",),
            vmem_limit_bytes=_VMEM_LIMIT_BYTES,
        ),
        cost_estimate=pl.CostEstimate(flops=0, transcendentals=0,
                                      bytes_accessed=2 * nbytes),
    )(x)


# ---------------------- robust fallback (copy) path -------------------------


def _flatten_fallback(x, B, D):
    dtype = x.dtype
    itemsize = np.dtype(dtype).itemsize
    sub = 8 * max(1, 4 // itemsize)
    nbytes = B * D * itemsize

    # One XLA reshape materializes the flattened layout (this is the
    # unavoidable relayout; the kernel below streams it).  This is one extra
    # HBM pass versus the fused path and is only used when Mosaic cannot lower
    # the in-kernel reshape for this shape/dtype.
    xf = jnp.reshape(x, (B, D))

    # Column tile: full rows when they fit the block budget (always layout
    # legal), otherwise a multiple of 128 so stores stay lane-dense except for
    # the final ragged column block.
    max_row_elems = max(128, int(_TARGET_BLOCK_BYTES // (sub * itemsize)))
    if D <= max_row_elems:
        tile_d = D
    else:
        tile_d = (max_row_elems // 128) * 128
    # TODO(synk): for D < 128 every store is lane-masked (effective bandwidth
    # ~ D/128); recovering it needs a repacking DMA path.

    # Row tile: multiple of the sublane packing (or full B), ~4 MiB combined,
    # independent of batch size (2-D tiling keeps VMEM footprint constant).
    if B <= sub:
        tile_b = B
    else:
        want = max(sub, (int(_TARGET_BLOCK_BYTES // max(1, tile_d * itemsize)) // sub) * sub)
        tile_b = min((B // sub) * sub, want)

    nb, nd = pl.cdiv(B, tile_b), pl.cdiv(D, tile_d)
    if nb * nd == 1 and B >= 2 * sub and nbytes >= (2 << 20):
        tile_b = _ceil_to((B + 1) // 2, sub)      # feed both v7x TensorCores
        nb = pl.cdiv(B, tile_b)

    # TODO(synk): a direct HBM->HBM DMA copy (memory_space=pl.ANY +
    # pltpu.make_async_copy) would drop the VMEM staging here, but DMA src/dst
    # shapes must match, so it cannot absorb the relayout itself.
    return pl.pallas_call(
        _copy_block_kernel,
        out_shape=jax.ShapeDtypeStruct((B, D), dtype),
        grid=(nb, nd),
        in_specs=[pl.BlockSpec((tile_b, tile_d), lambda i, j: (i, j))],
        out_specs=pl.BlockSpec((tile_b, tile_d), lambda i, j: (i, j)),
        compiler_params=pltpu.CompilerParams(
            dimension_semantics=("parallel", "parallel"),
            vmem_limit_bytes=_VMEM_LIMIT_BYTES,
        ),
        cost_estimate=pl.CostEstimate(flops=0, transcendentals=0,
                                      bytes_accessed=2 * nbytes),
    )(xf)


# ------------------------------ public API ----------------------------------


_FUSED_VERDICT = {}   # (shape, dtype) -> bool: does the fused path lower for this case?


def flatten_pallas(x):
    """Pallas equivalent of torch `x.view(x.size(0), -1)`."""
    B = int(x.shape[0])
    D = int(np.prod(x.shape[1:], dtype=np.int64)) if x.ndim > 1 else 1

    if x.ndim <= 2:
        # Already flat (or 1-D): nothing to relayout, just stream it.
        return _flatten_fallback(x, B, D)

    key = (tuple(int(d) for d in x.shape), str(np.dtype(x.dtype)))
    verdict = _FUSED_VERDICT.get(key)
    if verdict is not False:
        try:
            out = _flatten_fused(x, B, D)
            if verdict is None:
                # First eager call for this shape/dtype: force compile+run now
                # so a Mosaic lowering rejection of the in-kernel reshape is
                # caught here and we can fall back.  Later calls skip the sync.
                out = jax.block_until_ready(out)
                _FUSED_VERDICT[key] = True
            return out
        except Exception:
            _FUSED_VERDICT[key] = False
    return _flatten_fallback(x, B, D)


if __name__ == "__main__":
    key = jax.random.PRNGKey(0)

    # NCHW conv feature map: (B=2, C=4, H=16, W=16) -> (2, 1024)
    x = jax.random.normal(key, (2, 4, 16, 16), dtype=jnp.float32)
    out = jax.block_until_ready(flatten_pallas(x))
    assert out.shape == (2, 4 * 16 * 16), out.shape
    np.testing.assert_array_equal(np.asarray(out), np.asarray(x).reshape(2, -1))

    # Ragged shape (numel not a multiple of 128) exercises masked-lane stores.
    x2 = jax.random.normal(key, (4, 3, 7, 5), dtype=jnp.float32)
    out2 = jax.block_until_ready(flatten_pallas(x2))
    np.testing.assert_array_equal(np.asarray(out2), np.asarray(x2).reshape(4, -1))

    # bf16 exercises the packed (16, 128) sublane constraint.
    x3 = jax.random.normal(key, (2, 8, 4, 64), dtype=jnp.bfloat16)
    out3 = jax.block_until_ready(flatten_pallas(x3))
    np.testing.assert_array_equal(
        np.asarray(out3, dtype=np.float32),
        np.asarray(x3, dtype=np.float32).reshape(2, -1))

    print("KERNEL_OK")
</pallas_src>

<mosaic_0001>
module attributes {stable_mosaic.version = 11 : i64} {
  func.func @_flatten_block_kernel(%arg0: i32, %arg1: memref<2x4x16x16xf32, #tpu.memory_space<vmem>>, %arg2: memref<2x1024xf32, #tpu.memory_space<vmem>>) attributes {dimension_semantics = [#tpu.dimension_semantics<parallel>], iteration_bounds = array<i64: 1>, scalar_prefetch = 0 : i64, scratch_operands = 0 : i64, tpu.core_type = #tpu.core_type<tc>, window_params = [{transform_indices = @transform_0, window_bounds = array<i64: 2, 4, 16, 16>}, {transform_indices = @transform_1, window_bounds = array<i64: 2, 1024>}]} {
    %c0 = arith.constant 0 : index
    %c0_0 = arith.constant 0 : index
    %c0_1 = arith.constant 0 : index
    %c0_2 = arith.constant 0 : index
    %0 = vector.load %arg1[%c0, %c0_0, %c0_1, %c0_2] : memref<2x4x16x16xf32, #tpu.memory_space<vmem>>, vector<2x4x16x16xf32>
    %1 = vector.shape_cast %0 : vector<2x4x16x16xf32> to vector<2x1024xf32>
    %c0_3 = arith.constant 0 : index
    %c0_4 = arith.constant 0 : index
    %2 = vector.load %arg2[%c0_3, %c0_4] : memref<2x1024xf32, #tpu.memory_space<vmem>>, vector<2x1024xf32>
    tpu.vector_store %arg2[%c0_3, %c0_4], %1 {strides = array<i32>} : memref<2x1024xf32, #tpu.memory_space<vmem>>, vector<2x1024xf32>,
    return
  }
  func.func @transform_0(%arg0: i32) -> (i32, i32, i32, i32) {
    %c0_i32 = arith.constant 0 : i32
    %c0_i32_0 = arith.constant 0 : i32
    %c0_i32_1 = arith.constant 0 : i32
    %c0_i32_2 = arith.constant 0 : i32
    return %arg0, %c0_i32, %c0_i32_0, %c0_i32_1 : i32, i32, i32, i32
  }
  func.func @transform_1(%arg0: i32) -> (i32, i32) {
    %c0_i32 = arith.constant 0 : i32
    %c0_i32_0 = arith.constant 0 : i32
    return %arg0, %c0_i32 : i32, i32
  }
}

module attributes {stable_mosaic.version = 11 : i64} {
  func.func @_copy_block_kernel(%arg0: i32, %arg1: i32, %arg2: memref<2x1024xf32, #tpu.memory_space<vmem>>, %arg3: memref<2x1024xf32, #tpu.memory_space<vmem>>) attributes {dimension_semantics = [#tpu.dimension_semantics<parallel>, #tpu.dimension_semantics<parallel>], iteration_bounds = array<i64: 1, 1>, scalar_prefetch = 0 : i64, scratch_operands = 0 : i64, tpu.core_type = #tpu.core_type<tc>, window_params = [{transform_indices = @transform_0, window_bounds = array<i64: 2, 1024>}, {transform_indices = @transform_1, window_bounds = array<i64: 2, 1024>}]} {
    %c0 = arith.constant 0 : index
    %c0_0 = arith.constant 0 : index
    %0 = vector.load %arg2[%c0, %c0_0] : memref<2x1024xf32, #tpu.memory_space<vmem>>, vector<2x1024xf32>
    %c0_1 = arith.constant 0 : index
    %c0_2 = arith.constant 0 : index
    %1 = vector.load %arg3[%c0_1, %c0_2] : memref<2x1024xf32, #tpu.memory_space<vmem>>, vector<2x1024xf32>
    tpu.vector_store %arg3[%c0_1, %c0_2], %0 {strides = array<i32>} : memref<2x1024xf32, #tpu.memory_space<vmem>>, vector<2x1024xf32>,
    return
  }
  func.func @transform_0(%arg0: i32, %arg1: i32) -> (i32, i32) {
    %c0_i32 = arith.constant 0 : i32
    return %arg0, %arg1 : i32, i32
  }
  func.func @transform_1(%arg0: i32, %arg1: i32) -> (i32, i32) {
    %c0_i32 = arith.constant 0 : i32
    return %arg0, %arg1 : i32, i32
  }
}

</mosaic_0001>

<bundles_post_ra>
// kernel: tpu_custom_call.1
= control target key start
LH: loop header
LB: loop body
LE: loop exit
PB: predicated region body
PF: predicated region fallthrough
CT: control target
= control target key end

     0   :  { %6 = vsyncpa [#allocation3], 0  ;;  %s126_s0 = inlined_call_operand.hbm [shape: f32[2,1024], index: 0, kind: input, shape index: {}]   ;;  %s127_s1 = inlined_call_operand.hbm [shape: f32[2,1024], index: 1, kind: output, shape index: {}]  }
   0x1   :  { %7 = vsyncpa [#allocation4], 0  ;;  %s90_s6 = smov [#allocation2]   ;;  %s42_s10 = scalar_lea.hbm %s126_s0, 256 }
   0x2   :  { %s14_s7 = sshll.u32 %s90_s6, 4  ;;  %p43_p0 = scmp.ne.s32.totalorder %s126_s0, %s42_s10  ;;  %s15_s7 = int_to_ptr.vmem [resolvable:$true] %s14_s7 }
   0x3   :  { %p46_p1 = scmp.lt.u32.totalorder %s42_s10, %s126_s0 }
   0x5   :  { %p48_p2 = pnand %p46_p1, %p43_p0 }
   0x7   :  { %51 = shalt.err (!%p48_p2)
}
   0x8   :  { %s52_s15 = scalar_lea.vmem %s15_s7, 256  ;;  %p57_p4 = scmp.lt.s32.totalorder %s15_s7, %s15_s7 }
   0x9   :  { %p53_p3 = scmp.ne.s32.totalorder %s15_s7, %s52_s15  ;;  %p58_p5 = scmp.lt.s32.totalorder %s52_s15, %s52_s15 }
   0xb   :  { %p59_p6 = por %p58_p5, %p57_p4 }
   0xd   :  { %p60_p7 = pnand %p59_p6, %p53_p3 }
   0xf   :  { %63 = shalt.err (!%p60_p7)
}
  0x10   :  { %17 = dma.hbm_to_vmem [thread:$0]  %s126_s0, 256, %s15_s7, [#allocation3]  }
  0x11   :  { %86 = dma.done.wait [#allocation3], 256  }
  0x12   :  { %87 = vsyncadd [#allocation3], 4294967040  ;;  %s91_s18 = smov [#allocation5]   ;;  %v21_v0 = vld [vmem:[#allocation2] sm:$0xff]  ;;  %v22_v1 = vld [vmem:[#allocation2 + $0x8] sm:$0xff] }
  0x13   :  { %s31_s19 = sshll.u32 %s91_s18, 4  ;;  %23 = vst [vmem:[#allocation5] sm:$0xff] %v21_v0  ;;  %24 = vst [vmem:[#allocation5 + $0x8] sm:$0xff] %v22_v1  ;;  %s32_s19 = int_to_ptr.vmem [resolvable:$true] %s31_s19 }
  0x14   :  { %s64_s20 = scalar_lea.vmem %s32_s19, 256  ;;  %p69_p9 = scmp.lt.s32.totalorder %s32_s19, %s32_s19 }
  0x15   :  { %p65_p8 = scmp.ne.s32.totalorder %s32_s19, %s64_s20  ;;  %p70_p10 = scmp.lt.s32.totalorder %s64_s20, %s64_s20 }
  0x17   :  { %p71_p11 = por %p70_p10, %p69_p9 }
  0x19   :  { %p72_p12 = pnand %p71_p11, %p65_p8 }
  0x1b   :  { %75 = shalt.err (!%p72_p12)
}
  0x1c   :  { %s76_s0 = scalar_lea.hbm %s127_s1, 256 }
  0x1d   :  { %p77_p13 = scmp.ne.s32.totalorder %s127_s1, %s76_s0  ;;  %p80_p0 = scmp.lt.u32.totalorder %s76_s0, %s127_s1 }
  0x1f   :  { %p82_p1 = pnand %p80_p0, %p77_p13 }
  0x21   :  { %85 = shalt.err (!%p82_p1)
}
  0x22   :  { %34 = dma.vmem_to_hbm [thread:$0]  %s32_s19, 256, %s127_s1, [#allocation4]  }
  0x23   :  { %88 = dma.done.wait [#allocation4], 256  }
  0x24   :  { %89 = vsyncadd [#allocation4], 4294967040 }
  0x25   :  { %38 = vsyncpa [#allocation3], 1 }
  0x26   :  { %39 = vsyncpa [#allocation4], 1 }

</bundles_post_ra>
